<compile_context>
chip_gen: v7x
topology: tpu7x:2x2x1
jax: 0.10.0
libtpu: 0.0.40
codegen_flags: <defaults>
</compile_context>

<pallas_src>
import functools
import math

import numpy as np
import jax
import jax.numpy as jnp
from jax.experimental import pallas as pl
from jax.experimental.pallas import tpu as pltpu

LEAKY_SLOPE = 0.01   # nn.LeakyReLU default
LN_EPS = 1e-5        # nn.LayerNorm default
NEG_BIG = 1e30       # additive key-padding bias magnitude


def _leaky_relu(x):
    return jnp.where(x >= 0, x, LEAKY_SLOPE * x)


def _vmem_limit(nbytes):
    # generous but bounded scoped-VMEM request (portable v5e/v6e/v7x)
    return int(min(max(2 * nbytes, 16 * 1024 * 1024), 48 * 1024 * 1024))


# --------------- tiled, two-branch fused graph kernel (GCN + MLP) -------------
# Per row-block:  h = LeakyReLU((A_blk @ X) @ Wc + bc) ; h = LeakyReLU(h@W1+b1)
#                 out_blk = h @ Wp + bp
# (A@X)@Wc == A@(X@Wc): same FLOPs, but lets row blocks be fully independent so
# the grid can be ("parallel","parallel") and BlockSpec auto-pipelining overlaps
# the A-block DMA with compute.

def _graph_branch_kernel(a_ref, x_ref, wc_ref, bc_ref, w1_ref, b1_ref,
                         wp_ref, bp_ref, o_ref):
    ax = jnp.dot(a_ref[...], x_ref[...], preferred_element_type=jnp.float32)
    h = jnp.dot(ax, wc_ref[...], preferred_element_type=jnp.float32) + bc_ref[...]
    h = _leaky_relu(h)
    h = _leaky_relu(jnp.dot(h, w1_ref[...], preferred_element_type=jnp.float32)
                    + b1_ref[...])
    o_ref[...] = (jnp.dot(h, wp_ref[...], preferred_element_type=jnp.float32)
                  + bp_ref[...]).astype(o_ref.dtype)


def graph_branches(a1, x1, a2, x2,
                   wc1, bc1, wc2, bc2,
                   w11, b11, w12, b12,
                   wp1, bp1, wp2, bp2):
    """Runs both protein GCN branches in one kernel; returns (h1, h2)."""
    N1, F = x1.shape
    N2 = x2.shape[0]
    Od = w11.shape[1]
    Td = wp1.shape[1]
    Nmax = max(N1, N2)

    def pad2(a, r, c):
        return jnp.pad(a, ((0, r - a.shape[0]), (0, c - a.shape[1])))

    A = jnp.stack([pad2(a1, Nmax, Nmax), pad2(a2, Nmax, Nmax)])     # [2,Nmax,Nmax]
    X = jnp.stack([pad2(x1, Nmax, F), pad2(x2, Nmax, F)])           # [2,Nmax,F]
    WC = jnp.stack([wc1, wc2]); BC = jnp.stack([bc1.reshape(1, F), bc2.reshape(1, F)])
    W1 = jnp.stack([w11, w12]); B1 = jnp.stack([b11.reshape(1, Od), b12.reshape(1, Od)])
    WP = jnp.stack([wp1, wp2]); BP = jnp.stack([bp1.reshape(1, Td), bp2.reshape(1, Td)])

    # row-block size: whole graph if small, 512-row tiles otherwise (÷8 safe)
    TM = Nmax if Nmax <= 512 else 512
    nb = -(-Nmax // TM)

    fp = 4 * (2 * TM * Nmax + 2 * Nmax * F
              + 2 * (F * F + F + F * Od + Od + Od * Td + Td)
              + 2 * TM * Td + TM * (F + Od + Td))

    out = pl.pallas_call(
        _graph_branch_kernel,
        grid=(2, nb),
        in_specs=[
            pl.BlockSpec((None, TM, Nmax), lambda g, i: (g, i, 0)),   # A row block
            pl.BlockSpec((None, Nmax, F), lambda g, i: (g, 0, 0)),    # X (resident)
            pl.BlockSpec((None, F, F),    lambda g, i: (g, 0, 0)),
            pl.BlockSpec((None, 1, F),    lambda g, i: (g, 0, 0)),
            pl.BlockSpec((None, F, Od),   lambda g, i: (g, 0, 0)),
            pl.BlockSpec((None, 1, Od),   lambda g, i: (g, 0, 0)),
            pl.BlockSpec((None, Od, Td),  lambda g, i: (g, 0, 0)),
            pl.BlockSpec((None, 1, Td),   lambda g, i: (g, 0, 0)),
        ],
        out_specs=pl.BlockSpec((None, TM, Td), lambda g, i: (g, i, 0)),
        out_shape=jax.ShapeDtypeStruct((2, Nmax, Td), jnp.float32),
        compiler_params=pltpu.CompilerParams(
            dimension_semantics=("parallel", "parallel"),
            vmem_limit_bytes=_vmem_limit(fp)),
    )(A, X, WC, BC, W1, B1, WP, BP)
    # TODO(synk): zero-pad Td to 128 lanes (lane-dense stores) for large graphs.
    return out[0, :N1], out[1, :N2]


# ------------- fused transformer encoder stack + pool + fc kernel -------------
# Per-layer weights (head-major, prepared host-side):
#   wq/wk/wv [H,D,Dh], bq/bk/bv [H,1,Dh], wo [H,Dh,D], bo [1,D],
#   g1,beta1 [1,D], w1 [D,FF], b1 [1,FF], w2 [FF,D], b2 [1,D], g2,beta2 [1,D]
_N_PER_LAYER = 16


def _layer_norm(v, g, b):
    mu = jnp.mean(v, axis=-1, keepdims=True)
    var = jnp.mean(jnp.square(v - mu), axis=-1, keepdims=True)
    return (v - mu) * jax.lax.rsqrt(var + LN_EPS) * g + b


def _encoder_stack_kernel(*args, nhead, num_layers):
    lens_ref, x_ref = args[0], args[1]
    nw = _N_PER_LAYER * num_layers
    w_refs = args[2:2 + nw]
    fw_ref, fb_ref = args[2 + nw], args[3 + nw]
    o_ref = args[4 + nw]

    x = x_ref[...]                               # [L, D]
    L, D = x.shape
    Dh = D // nhead
    scale = 1.0 / math.sqrt(Dh)

    # valid-token mask rebuilt in-kernel from the scalar-prefetched length
    n_valid = lens_ref[pl.program_id(0)]
    pos = jax.lax.broadcasted_iota(jnp.int32, (1, L), 1)
    valid = (pos < n_valid).astype(jnp.float32)                      # [1, L]
    # key-padding bias: broadcast ONCE for all heads / layers
    kb = jnp.broadcast_to(((valid - 1.0) * NEG_BIG)[None], (nhead, L, L))
    # TODO(synk): switch to a KV-block flash-style inner loop once L > ~512.

    for layer in range(num_layers):              # static unroll, weights resident
        (wq, bq, wk, bk, wv, bv, wo, bo, g1, beta1,
         w1, b1, w2, b2, g2, beta2) = [
            r[...] for r in w_refs[_N_PER_LAYER * layer:_N_PER_LAYER * (layer + 1)]]

        # --- multi-head self-attention: heads as a leading batch dim ---
        xb = jnp.broadcast_to(x[None], (nhead, L, D))
        q3 = jnp.einsum('hld,hde->hle', xb, wq,
                        preferred_element_type=jnp.float32) + bq      # [H,L,Dh]
        k3 = jnp.einsum('hld,hde->hle', xb, wk,
                        preferred_element_type=jnp.float32) + bk
        v3 = jnp.einsum('hld,hde->hle', xb, wv,
                        preferred_element_type=jnp.float32) + bv
        s = jnp.einsum('hqd,hkd->hqk', q3, k3,
                       preferred_element_type=jnp.float32) * scale + kb
        p = jnp.exp(s - jnp.max(s, axis=-1, keepdims=True))
        p = p / jnp.sum(p, axis=-1, keepdims=True)                    # exact divide
        o3 = jnp.einsum('hqk,hkd->hqd', p, v3,
                        preferred_element_type=jnp.float32)           # [H,L,Dh]
        attn = jnp.sum(jnp.einsum('hqd,hde->hqe', o3, wo,
                                  preferred_element_type=jnp.float32),
                       axis=0) + bo                                   # [L,D]
        x = _layer_norm(x + attn, g1, beta1)                          # post-norm
        # --- feed-forward (relu) ---
        ff = jnp.maximum(
            jnp.dot(x, w1, preferred_element_type=jnp.float32) + b1, 0.0)
        ff = jnp.dot(ff, w2, preferred_element_type=jnp.float32) + b2
        x = _layer_norm(x + ff, g2, beta2)

    # --- masked mean pooling + final linear ---
    pooled = jnp.dot(valid, x, preferred_element_type=jnp.float32)    # [1, D]
    pooled = pooled / jnp.maximum(jnp.sum(valid, axis=-1, keepdims=True), 1.0)
    out = (jnp.dot(pooled, fw_ref[...], preferred_element_type=jnp.float32)
           + fb_ref[...])
    o_ref[...] = out.astype(o_ref.dtype)


def _prep_layer(lp, nhead):
    """Convert column-convention layer weights to head-major kernel layout."""
    D = lp["w_q"].shape[0]
    Dh = D // nhead

    def split_cols(w, b):
        wh = jnp.stack([w[:, h * Dh:(h + 1) * Dh] for h in range(nhead)])
        bh = jnp.stack([b[h * Dh:(h + 1) * Dh].reshape(1, Dh) for h in range(nhead)])
        return wh, bh

    wq, bq = split_cols(lp["w_q"], lp["b_q"])
    wk, bk = split_cols(lp["w_k"], lp["b_k"])
    wv, bv = split_cols(lp["w_v"], lp["b_v"])
    wo = jnp.stack([lp["w_out"][h * Dh:(h + 1) * Dh, :] for h in range(nhead)])
    return [wq, bq, wk, bk, wv, bv, wo, lp["b_out"].reshape(1, D),
            lp["g1"].reshape(1, D), lp["beta1"].reshape(1, D),
            lp["w1"], lp["b1"].reshape(1, -1),
            lp["w2"], lp["b2"].reshape(1, -1),
            lp["g2"].reshape(1, D), lp["beta2"].reshape(1, D)]


def transformer_pool_fc(x, seq_lens, layers, final_w, final_b, *, nhead):
    """x: [B, L, D] packed sequences; seq_lens: [B] int32 valid lengths."""
    B, L, D = x.shape
    n_out = final_w.shape[1]
    num_layers = len(layers)
    FF = layers[0]["w1"].shape[1]

    weight_arrays, weight_specs = [], []

    def add(a):
        weight_arrays.append(a)
        # constant block index -> weights stay VMEM-resident across the grid
        # TODO(synk): pipeline_mode=pl.Buffered(1) to drop the redundant second
        #             weight buffer once Td/FF grow (negligible at Td=32).
        weight_specs.append(pl.BlockSpec(a.shape,
                                         lambda b, lens, _n=a.ndim: (0,) * _n))

    for lp in layers:
        for a in _prep_layer(lp, nhead):
            add(a)
    add(final_w)
    add(final_b.reshape(1, n_out))

    w_bytes = sum(int(np.prod(a.shape)) * 4 for a in weight_arrays)
    fp = (2 * w_bytes
          + 4 * 2 * (L * D + n_out)
          + 4 * (3 * nhead * L * (D // nhead) + 2 * nhead * L * L
                 + 4 * L * D + L * FF))

    grid_spec = pltpu.PrefetchScalarGridSpec(
        num_scalar_prefetch=1,                               # seq_lens -> SMEM
        grid=(B,),
        in_specs=[pl.BlockSpec((None, L, D), lambda b, lens: (b, 0, 0))]
                 + weight_specs,
        out_specs=pl.BlockSpec((None, 1, n_out), lambda b, lens: (b, 0, 0)),
    )
    out = pl.pallas_call(
        functools.partial(_encoder_stack_kernel, nhead=nhead,
                          num_layers=num_layers),
        grid_spec=grid_spec,
        out_shape=jax.ShapeDtypeStruct((B, 1, n_out), jnp.float32),
        compiler_params=pltpu.CompilerParams(
            dimension_semantics=("parallel",),               # 2x on v7x megacore
            vmem_limit_bytes=_vmem_limit(fp)),
    )(seq_lens, x, *weight_arrays)
    return out.reshape(B, n_out)


# --------------------------- model glue ---------------------------------------

def gcn_norm_dense(edge_index, num_nodes):
    """Dense GCNConv normalization: directed edges, duplicate edges summed,
    one unit self-loop per node, D^-1/2 A D^-1/2 with in-degree."""
    src = np.asarray(edge_index[0], np.int64)
    dst = np.asarray(edge_index[1], np.int64)
    keep = src != dst
    src, dst = src[keep], dst[keep]
    loops = np.arange(num_nodes, dtype=np.int64)
    src = np.concatenate([src, loops])
    dst = np.concatenate([dst, loops])
    w = np.ones(src.shape[0], np.float32)
    deg = np.zeros(num_nodes, np.float32)
    np.add.at(deg, dst, w)
    dinv = np.where(deg > 0, 1.0 / np.sqrt(np.maximum(deg, 1e-12)), 0.0)
    dinv = dinv.astype(np.float32)
    A = np.zeros((num_nodes, num_nodes), np.float32)
    np.add.at(A, (dst, src), dinv[dst] * w * dinv[src])      # row=target, col=source
    return jnp.asarray(A)


def forward(params, cfg, pro1_x, pro1_anorm, pro1_batch,
            pro2_x, pro2_anorm, pro2_batch,
            mas1_s, mas1_f, mas2_s, mas2_f,
            len1s, len1f, len2s, len2f):
    Td = cfg["transformer_dim"]
    B = mas1_s.shape[0]

    # --- both graph branches in a single parallel-grid kernel ---
    h1, h2 = graph_branches(
        pro1_anorm, pro1_x, pro2_anorm, pro2_x,
        params["pro1_conv_w"], params["pro1_conv_b"],
        params["pro2_conv_w"], params["pro2_conv_b"],
        params["pro1_fc1_w"], params["pro1_fc1_b"],
        params["pro2_fc1_w"], params["pro2_fc1_b"],
        params["node_proj1_w"], params["node_proj1_b"],
        params["node_proj2_w"], params["node_proj2_b"])

    # Descriptor projections are multiplied by 0 in the reference forward; their
    # contribution is exact zero rows (they still occupy valid sequence slots),
    # so the 4 projection matmuls are skipped and zeros are spliced in.

    pro1_batch = np.asarray(pro1_batch)
    pro2_batch = np.asarray(pro2_batch)
    N1, N2 = pro1_batch.shape[0], pro2_batch.shape[0]
    zero_row = N1 + N2
    per_sample = []
    for i in range(B):
        idx1 = np.where(pro1_batch == i)[0]
        idx2 = np.where(pro2_batch == i)[0] + N1
        d = int(len1s[i]) + int(len1f[i]) + int(len2s[i]) + int(len2f[i])
        per_sample.append((idx1, idx2, d))
    seq_lens = np.array([len(a) + len(b) + d for a, b, d in per_sample], np.int32)
    max_len = int(-(-int(seq_lens.max()) // 8) * 8)          # sublane-friendly L
    idx_tbl = np.full((B, max_len), zero_row, np.int32)
    for i, (idx1, idx2, d) in enumerate(per_sample):
        n1, n2 = len(idx1), len(idx2)
        idx_tbl[i, :n1] = idx1
        idx_tbl[i, n1:n1 + n2] = idx2
        # descriptor slots [n1+n2, n1+n2+d) stay zero_row (exact zeros, mask=1)

    # TODO(synk): fuse this packing gather into the transformer kernel (two
    # contiguous DMA copies per sample from h1/h2 in HBM) to drop the [B,L,Td]
    # HBM round trip.
    src = jnp.concatenate([h1, h2, jnp.zeros((1, Td), jnp.float32)], axis=0)
    x = jnp.take(src, jnp.asarray(idx_tbl), axis=0)          # [B, L, Td]

    return transformer_pool_fc(x, jnp.asarray(seq_lens), params["layers"],
                               params["final_w"], params["final_b"],
                               nhead=cfg["nhead"])


# --------------------------- parameter init -----------------------------------

def init_params(key, cfg):
    F = cfg["num_features_pro"]
    Od = cfg["output_dim"]
    Dd = cfg["descriptor_dim"]
    Td = cfg["transformer_dim"]
    FF = cfg["dim_feedforward"]
    No = cfg["n_output"]

    keys = list(jax.random.split(key, 128))
    kit = iter(keys)

    def lin(fin, fout):
        s = 1.0 / np.sqrt(fin)
        w = jax.random.uniform(next(kit), (fin, fout), jnp.float32, -s, s)
        b = jax.random.uniform(next(kit), (fout,), jnp.float32, -s, s)
        return w, b

    p = {}
    p["pro1_conv_w"], p["pro1_conv_b"] = lin(F, F)
    p["pro2_conv_w"], p["pro2_conv_b"] = lin(F, F)
    p["pro1_fc1_w"], p["pro1_fc1_b"] = lin(F, Od)
    p["pro2_fc1_w"], p["pro2_fc1_b"] = lin(F, Od)
    p["node_proj1_w"], p["node_proj1_b"] = lin(Od, Td)
    p["node_proj2_w"], p["node_proj2_b"] = lin(Od, Td)
    # descriptor projections exist in the module but are multiplied by 0 in
    # forward; kept for structural parity, unused at inference.
    p["d1s_w"], p["d1s_b"] = lin(Dd, Td)
    p["d1f_w"], p["d1f_b"] = lin(Dd, Td)
    p["d2s_w"], p["d2s_b"] = lin(Dd, Td)
    p["d2f_w"], p["d2f_b"] = lin(Dd, Td)
    layers = []
    for _ in range(cfg["num_layers"]):
        lp = {}
        lp["w_q"], lp["b_q"] = lin(Td, Td)
        lp["w_k"], lp["b_k"] = lin(Td, Td)
        lp["w_v"], lp["b_v"] = lin(Td, Td)
        lp["w_out"], lp["b_out"] = lin(Td, Td)
        lp["w1"], lp["b1"] = lin(Td, FF)
        lp["w2"], lp["b2"] = lin(FF, Td)
        lp["g1"] = jnp.ones((Td,), jnp.float32)
        lp["beta1"] = jnp.zeros((Td,), jnp.float32)
        lp["g2"] = jnp.ones((Td,), jnp.float32)
        lp["beta2"] = jnp.zeros((Td,), jnp.float32)
        layers.append(lp)
    p["layers"] = layers
    p["final_w"], p["final_b"] = lin(Td, No)
    return p


# --------------------------- main ---------------------------------------------

if __name__ == "__main__":
    cfg = dict(n_output=1, num_features_pro=64, output_dim=32, descriptor_dim=16,
               transformer_dim=32, nhead=4, num_layers=2, dim_feedforward=64)

    key = jax.random.PRNGKey(0)
    kp, k1, k2, k3, k4, k5, k6 = jax.random.split(key, 7)
    params = init_params(kp, cfg)

    # graph data (two disjoint graphs per batch, PyG-style batching)
    N1, N2, B = 10, 12, 2
    pro1_batch = np.array([0] * 5 + [1] * 5, np.int32)
    pro2_batch = np.array([0] * 6 + [1] * 6, np.int32)
    rng = np.random.default_rng(0)

    def sample_edges(counts, n_edges_per_graph):
        src, dst = [], []
        off = 0
        for c in counts:
            src.append(rng.integers(0, c, n_edges_per_graph) + off)
            dst.append(rng.integers(0, c, n_edges_per_graph) + off)
            off += c
        return np.stack([np.concatenate(src), np.concatenate(dst)])

    pro1_edge_index = sample_edges([5, 5], 10)   # [2, 20]
    pro2_edge_index = sample_edges([6, 6], 12)   # [2, 24]
    pro1_anorm = gcn_norm_dense(pro1_edge_index, N1)
    pro2_anorm = gcn_norm_dense(pro2_edge_index, N2)

    pro1_x = jax.random.normal(k1, (N1, cfg["num_features_pro"]), jnp.float32)
    pro2_x = jax.random.normal(k2, (N2, cfg["num_features_pro"]), jnp.float32)

    MAX_DESC = 6
    mas1_s = jax.random.normal(k3, (B, MAX_DESC, cfg["descriptor_dim"]), jnp.float32)
    mas1_f = jax.random.normal(k4, (B, MAX_DESC, cfg["descriptor_dim"]), jnp.float32)
    mas2_s = jax.random.normal(k5, (B, MAX_DESC, cfg["descriptor_dim"]), jnp.float32)
    mas2_f = jax.random.normal(k6, (B, MAX_DESC, cfg["descriptor_dim"]), jnp.float32)
    len1s = np.array([3, 2]); len1f = np.array([2, 3])
    len2s = np.array([2, 4]); len2f = np.array([1, 2])

    out = forward(params, cfg,
                  pro1_x, pro1_anorm, pro1_batch,
                  pro2_x, pro2_anorm, pro2_batch,
                  mas1_s, mas1_f, mas2_s, mas2_f,
                  len1s, len1f, len2s, len2f)
    out = jax.block_until_ready(out)
    assert out.shape == (B, cfg["n_output"]) and np.all(np.isfinite(np.asarray(out)))
    print("KERNEL_OK")
</pallas_src>

<mosaic_0001>
module attributes {stable_mosaic.version = 11 : i64} {
  func.func @_graph_branch_kernel(%arg0: i32, %arg1: i32, %arg2: memref<1x12x12xf32, #tpu.memory_space<vmem>>, %arg3: memref<1x12x64xf32, #tpu.memory_space<vmem>>, %arg4: memref<1x64x64xf32, #tpu.memory_space<vmem>>, %arg5: memref<1x1x64xf32, #tpu.memory_space<vmem>>, %arg6: memref<1x64x32xf32, #tpu.memory_space<vmem>>, %arg7: memref<1x1x32xf32, #tpu.memory_space<vmem>>, %arg8: memref<1x32x32xf32, #tpu.memory_space<vmem>>, %arg9: memref<1x1x32xf32, #tpu.memory_space<vmem>>, %arg10: memref<1x12x32xf32, #tpu.memory_space<vmem>>) attributes {dimension_semantics = [#tpu.dimension_semantics<parallel>, #tpu.dimension_semantics<parallel>], iteration_bounds = array<i64: 2, 1>, scalar_prefetch = 0 : i64, scratch_operands = 0 : i64, tpu.core_type = #tpu.core_type<tc>, window_params = [{transform_indices = @transform_0, window_bounds = array<i64: 1, 12, 12>}, {transform_indices = @transform_1, window_bounds = array<i64: 1, 12, 64>}, {transform_indices = @transform_2, window_bounds = array<i64: 1, 64, 64>}, {transform_indices = @transform_3, window_bounds = array<i64: 1, 1, 64>}, {transform_indices = @transform_4, window_bounds = array<i64: 1, 64, 32>}, {transform_indices = @transform_5, window_bounds = array<i64: 1, 1, 32>}, {transform_indices = @transform_6, window_bounds = array<i64: 1, 32, 32>}, {transform_indices = @transform_7, window_bounds = array<i64: 1, 1, 32>}, {transform_indices = @transform_8, window_bounds = array<i64: 1, 12, 32>}]} {
    %c0 = arith.constant 0 : index
    %c0_0 = arith.constant 0 : index
    %c0_1 = arith.constant 0 : index
    %0 = vector.load %arg2[%c0, %c0_0, %c0_1] : memref<1x12x12xf32, #tpu.memory_space<vmem>>, vector<1x12x12xf32>
    %1 = vector.shape_cast %0 : vector<1x12x12xf32> to vector<12x12xf32>
    %c0_2 = arith.constant 0 : index
    %c0_3 = arith.constant 0 : index
    %c0_4 = arith.constant 0 : index
    %2 = vector.load %arg3[%c0_2, %c0_3, %c0_4] : memref<1x12x64xf32, #tpu.memory_space<vmem>>, vector<1x12x64xf32>
    %3 = vector.shape_cast %2 : vector<1x12x64xf32> to vector<12x64xf32>
    %cst = arith.constant dense<0.000000e+00> : vector<12x64xf32>
    %4 = tpu.matmul %1, %3, %cst {dimension_numbers = #tpu.dot_dimension_numbers<[1], [0], [0], [1], [0, 0, 1, 1], [], []>} : vector<12x12xf32>, vector<12x64xf32>, vector<12x64xf32> -> vector<12x64xf32>
    %c0_5 = arith.constant 0 : index
    %c0_6 = arith.constant 0 : index
    %c0_7 = arith.constant 0 : index
    %5 = vector.load %arg4[%c0_5, %c0_6, %c0_7] : memref<1x64x64xf32, #tpu.memory_space<vmem>>, vector<1x64x64xf32>
    %6 = vector.shape_cast %5 : vector<1x64x64xf32> to vector<64x64xf32>
    %cst_8 = arith.constant dense<0.000000e+00> : vector<12x64xf32>
    %7 = tpu.matmul %4, %6, %cst_8 {dimension_numbers = #tpu.dot_dimension_numbers<[1], [0], [0], [1], [0, 0, 1, 1], [], []>} : vector<12x64xf32>, vector<64x64xf32>, vector<12x64xf32> -> vector<12x64xf32>
    %c0_9 = arith.constant 0 : index
    %c0_10 = arith.constant 0 : index
    %c0_11 = arith.constant 0 : index
    %8 = vector.load %arg5[%c0_9, %c0_10, %c0_11] : memref<1x1x64xf32, #tpu.memory_space<vmem>>, vector<1x1x64xf32>
    %9 = vector.shape_cast %8 : vector<1x1x64xf32> to vector<1x64xf32>
    %10 = vector.broadcast %9 : vector<1x64xf32> to vector<12x64xf32>
    %11 = arith.addf %7, %10 : vector<12x64xf32>
    %cst_12 = arith.constant 0.000000e+00 : f32
    %12 = vector.broadcast %cst_12 : f32 to vector<12x64xf32>
    %13 = arith.cmpf oge, %11, %12 : vector<12x64xf32>
    %cst_13 = arith.constant 0.00999999977 : f32
    %14 = vector.broadcast %cst_13 : f32 to vector<12x64xf32>
    %15 = arith.mulf %14, %11 : vector<12x64xf32>
    %16 = arith.select %13, %11, %15 : vector<12x64xi1>, vector<12x64xf32>
    %c0_14 = arith.constant 0 : index
    %c0_15 = arith.constant 0 : index
    %c0_16 = arith.constant 0 : index
    %17 = vector.load %arg6[%c0_14, %c0_15, %c0_16] : memref<1x64x32xf32, #tpu.memory_space<vmem>>, vector<1x64x32xf32>
    %18 = vector.shape_cast %17 : vector<1x64x32xf32> to vector<64x32xf32>
    %cst_17 = arith.constant dense<0.000000e+00> : vector<12x32xf32>
    %19 = tpu.matmul %16, %18, %cst_17 {dimension_numbers = #tpu.dot_dimension_numbers<[1], [0], [0], [1], [0, 0, 1, 1], [], []>} : vector<12x64xf32>, vector<64x32xf32>, vector<12x32xf32> -> vector<12x32xf32>
    %c0_18 = arith.constant 0 : index
    %c0_19 = arith.constant 0 : index
    %c0_20 = arith.constant 0 : index
    %20 = vector.load %arg7[%c0_18, %c0_19, %c0_20] : memref<1x1x32xf32, #tpu.memory_space<vmem>>, vector<1x1x32xf32>
    %21 = vector.shape_cast %20 : vector<1x1x32xf32> to vector<1x32xf32>
    %22 = vector.broadcast %21 : vector<1x32xf32> to vector<12x32xf32>
    %23 = arith.addf %19, %22 : vector<12x32xf32>
    %cst_21 = arith.constant 0.000000e+00 : f32
    %24 = vector.broadcast %cst_21 : f32 to vector<12x32xf32>
    %25 = arith.cmpf oge, %23, %24 : vector<12x32xf32>
    %cst_22 = arith.constant 0.00999999977 : f32
    %26 = vector.broadcast %cst_22 : f32 to vector<12x32xf32>
    %27 = arith.mulf %26, %23 : vector<12x32xf32>
    %28 = arith.select %25, %23, %27 : vector<12x32xi1>, vector<12x32xf32>
    %c0_23 = arith.constant 0 : index
    %c0_24 = arith.constant 0 : index
    %c0_25 = arith.constant 0 : index
    %29 = vector.load %arg8[%c0_23, %c0_24, %c0_25] : memref<1x32x32xf32, #tpu.memory_space<vmem>>, vector<1x32x32xf32>
    %30 = vector.shape_cast %29 : vector<1x32x32xf32> to vector<32x32xf32>
    %cst_26 = arith.constant dense<0.000000e+00> : vector<12x32xf32>
    %31 = tpu.matmul %28, %30, %cst_26 {dimension_numbers = #tpu.dot_dimension_numbers<[1], [0], [0], [1], [0, 0, 1, 1], [], []>} : vector<12x32xf32>, vector<32x32xf32>, vector<12x32xf32> -> vector<12x32xf32>
    %c0_27 = arith.constant 0 : index
    %c0_28 = arith.constant 0 : index
    %c0_29 = arith.constant 0 : index
    %32 = vector.load %arg9[%c0_27, %c0_28, %c0_29] : memref<1x1x32xf32, #tpu.memory_space<vmem>>, vector<1x1x32xf32>
    %33 = vector.shape_cast %32 : vector<1x1x32xf32> to vector<1x32xf32>
    %34 = vector.broadcast %33 : vector<1x32xf32> to vector<12x32xf32>
    %35 = arith.addf %31, %34 : vector<12x32xf32>
    %c0_30 = arith.constant 0 : index
    %c0_31 = arith.constant 0 : index
    %c0_32 = arith.constant 0 : index
    %36 = vector.load %arg10[%c0_30, %c0_31, %c0_32] : memref<1x12x32xf32, #tpu.memory_space<vmem>>, vector<1x12x32xf32>
    %37 = vector.shape_cast %36 : vector<1x12x32xf32> to vector<12x32xf32>
    %38 = vector.shape_cast %35 : vector<12x32xf32> to vector<1x12x32xf32>
    tpu.vector_store %arg10[%c0_30, %c0_31, %c0_32], %38 {strides = array<i32>} : memref<1x12x32xf32, #tpu.memory_space<vmem>>, vector<1x12x32xf32>,
    return
  }
  func.func @transform_0(%arg0: i32, %arg1: i32) -> (i32, i32, i32) {
    %c0_i32 = arith.constant 0 : i32
    %c0_i32_0 = arith.constant 0 : i32
    return %arg0, %arg1, %c0_i32 : i32, i32, i32
  }
  func.func @transform_1(%arg0: i32, %arg1: i32) -> (i32, i32, i32) {
    %c0_i32 = arith.constant 0 : i32
    %c0_i32_0 = arith.constant 0 : i32
    %c0_i32_1 = arith.constant 0 : i32
    return %arg0, %c0_i32, %c0_i32_0 : i32, i32, i32
  }
  func.func @transform_2(%arg0: i32, %arg1: i32) -> (i32, i32, i32) {
    %c0_i32 = arith.constant 0 : i32
    %c0_i32_0 = arith.constant 0 : i32
    %c0_i32_1 = arith.constant 0 : i32
    return %arg0, %c0_i32, %c0_i32_0 : i32, i32, i32
  }
  func.func @transform_3(%arg0: i32, %arg1: i32) -> (i32, i32, i32) {
    %c0_i32 = arith.constant 0 : i32
    %c0_i32_0 = arith.constant 0 : i32
    %c0_i32_1 = arith.constant 0 : i32
    return %arg0, %c0_i32, %c0_i32_0 : i32, i32, i32
  }
  func.func @transform_4(%arg0: i32, %arg1: i32) -> (i32, i32, i32) {
    %c0_i32 = arith.constant 0 : i32
    %c0_i32_0 = arith.constant 0 : i32
    %c0_i32_1 = arith.constant 0 : i32
    return %arg0, %c0_i32, %c0_i32_0 : i32, i32, i32
  }
  func.func @transform_5(%arg0: i32, %arg1: i32) -> (i32, i32, i32) {
    %c0_i32 = arith.constant 0 : i32
    %c0_i32_0 = arith.constant 0 : i32
    %c0_i32_1 = arith.constant 0 : i32
    return %arg0, %c0_i32, %c0_i32_0 : i32, i32, i32
  }
  func.func @transform_6(%arg0: i32, %arg1: i32) -> (i32, i32, i32) {
    %c0_i32 = arith.constant 0 : i32
    %c0_i32_0 = arith.constant 0 : i32
    %c0_i32_1 = arith.constant 0 : i32
    return %arg0, %c0_i32, %c0_i32_0 : i32, i32, i32
  }
  func.func @transform_7(%arg0: i32, %arg1: i32) -> (i32, i32, i32) {
    %c0_i32 = arith.constant 0 : i32
    %c0_i32_0 = arith.constant 0 : i32
    %c0_i32_1 = arith.constant 0 : i32
    return %arg0, %c0_i32, %c0_i32_0 : i32, i32, i32
  }
  func.func @transform_8(%arg0: i32, %arg1: i32) -> (i32, i32, i32) {
    %c0_i32 = arith.constant 0 : i32
    %c0_i32_0 = arith.constant 0 : i32
    return %arg0, %arg1, %c0_i32 : i32, i32, i32
  }
}

</mosaic_0001>

<bundles_post_ra>
// kernel: tpu_custom_call.1
= control target key start
LH: loop header
LB: loop body
LE: loop exit
PB: predicated region body
PF: predicated region fallthrough
CT: control target
= control target key end

     0   :  { %s1284_s27 = smov 0   ;;  %s1286_s28 = smov 0   ;;  %s1369_s0 = inlined_call_operand.vmem [shape: f32[2,12,12], index: 0, kind: input, shape index: {}]   ;;  %s1370_s1 = inlined_call_operand.vmem [shape: f32[2,12,64], index: 1, kind: input, shape index: {}]   ;;  %s1371_s2 = inlined_call_operand.vmem [shape: f32[2,64,64], index: 2, kind: input, shape index: {}]   ;;  %s1372_s3 = inlined_call_operand.vmem [shape: f32[2,1,64], index: 3, kind: input, shape index: {}]   ;;  %s1373_s4 = inlined_call_operand.vmem [shape: f32[2,64,32], index: 4, kind: input, shape index: {}]   ;;  %s1374_s5 = inlined_call_operand.vmem [shape: f32[2,1,32], index: 5, kind: input, shape index: {}]   ;;  %s1375_s6 = inlined_call_operand.vmem [shape: f32[2,32,32], index: 6, kind: input, shape index: {}]   ;;  %s1376_s7 = inlined_call_operand.vmem [shape: f32[2,1,32], index: 7, kind: input, shape index: {}]   ;;  %s1377_s8 = inlined_call_operand.vmem [shape: f32[2,12,32], index: 8, kind: output, shape index: {}]  }
   0x1   :  { %s1288_s29 = smov 0  }
   0x2 LB: > { %s30_s30 = sadd.s32 1, %s1232_s28  ;;  %p1024_p0 = scmp.ge.s32.totalorder %s1236_s29, 1  ;;  %s1236_s29 = sphi %s1288_s29, %s18_s29   ;;  %s1232_s28 = sphi %s1286_s28, %s1381_s28   ;;  %s1228_s27 = sphi %s1284_s27, %s1380_s27  }
   0x3   : > { %p32_p1 = scmp.ge.s32.totalorder %s30_s30, 2  ;;  %p347_p2 = scmp.lt.s32.totalorder %s1236_s29, 3 }
   0x5   : > { %s1383_s30 = smov (%p32_p1, %s30_s30), 0  ;;  %p348_p3 = pnand %p1024_p0, %p347_p2 }
   0x6   : > { %p419_p4 = scmp.lt.s32.totalorder (!%p348_p3), %s1228_s27, 1  ;;  %vm478_vm0 = vcmask (!%p348_p3), 1043456   ;;  %vm471_vm1 = vcmask (!%p348_p3), 97280   ;;  %vm1238_vm2 = vmmov (!%p348_p3), 1   ;;  %vm572_vm4 = vcmask (!%p348_p3), 523264  }
   0x7   : > { %351 = sbr.rel (%p348_p3) target bundleno = 892 (0x37c), region = 52  ;;  %vm1312_vm3 = vmpackc.low (!%p348_p3), %vm478_vm0, %vm1238_vm2  ;;  %vm773_vm9 = vcmask (!%p348_p3), 261120   ;;  %vm856_vm10 = vcmask (!%p348_p3), 257024  }
   0xe   : > { %s1385_s27 = smov (!%p419_p4, %s1228_s27), 1 }
   0xf   : > { %s1305_s9 = sshll.u32 %s1385_s27, 4  ;;  %s1053_s10 = sshll.u32 %s1385_s27, 6 }
  0x10   : > { %s432_s13 = scalar_lea.vmem %s1370_s1, %s1305_s9  ;;  %s426_s16 = scalar_lea.vmem %s1369_s0, %s1305_s9 }
  0x11   : > { %v469_v1 = vld [vmem:[%s432_s13] sm:$0xff]  ;;  %v470_v2 = vld [vmem:[%s432_s13 + $0x8] sm:$0xf]  ;;  %s437_s19 = scalar_lea.vmem %s1371_s2, %s1053_s10  ;;  %s445_s22 = scalar_lea.vmem %s1373_s4, %s1053_s10 }
  0x12   : > { %v467_v3 = vld [vmem:[%s426_s16] sm:$0xff]  ;;  %v1143_v4 = vpack.c.bf16 %v470_v2, %v469_v1  ;;  %v558_v6 = vld [vmem:[%s437_s19 + $0x8] sm:$0xff]  ;;  %v559_v8 = vld [vmem:[%s437_s19 + $0x10] sm:$0xff]  ;;  %s440_s25 = scalar_lea.vmem %s1372_s3, %s1385_s27  ;;  %s1055_s26 = sshll.u32 %s1385_s27, 5 }
  0x13   : > { %1091 = vmatprep.mubr.msk.f32.mxu0 %vm471_vm1, %v467_v3  ;;  %v557_v5 = vld [vmem:[%s437_s19] sm:$0xff]  ;;  %v560_v9 = vld [vmem:[%s437_s19 + $0x18] sm:$0xff]  ;;  %v562_v12 = vld [vmem:[%s437_s19 + $0x28] sm:$0xff]  ;;  %s453_s12 = scalar_lea.vmem %s1375_s6, %s1055_s26  ;;  %s448_s15 = scalar_lea.vmem %s1374_s5, %s1385_s27 }
  0x14   : > { %v1149_v7 = vpack.c.bf16 %v558_v6, %v557_v5  ;;  %1145 = vmatprep.subr.msk.bf16.mxu0 %vm1312_vm3, %v1143_v4  ;;  %v1153_v10 = vpack.c.bf16 %v560_v9, %v559_v8  ;;  %v561_v11 = vld [vmem:[%s437_s19 + $0x20] sm:$0xff]  ;;  %v468_v13 = vld [vmem:[%s426_s16 + $0x8] sm:$0xf]  ;;  %v563_v15 = vld [vmem:[%s437_s19 + $0x30] sm:$0xff]  ;;  %s456_s18 = scalar_lea.vmem %s1376_s7, %s1385_s27  ;;  %s465_s21 = scalar_lea.vmem %s1377_s8, %s1305_s9 }
  0x15   : > { %1148 = vmatpush3.bf16.msk.msra.mxu0 %vm1312_vm3, %v1143_v4  ;;  %v1157_v14 = vpack.c.bf16 %v562_v12, %v561_v11  ;;  %v564_v16 = vld [vmem:[%s437_s19 + $0x38] sm:$0xff]  ;;  %v660_v18 = vld [vmem:[%s445_s22] sm:$0xff]  ;;  %v661_v19 = vld [vmem:[%s445_s22 + $0x8] sm:$0xff] }
  0x16   : > { %1150 = vmatprep.subr.bf16.mxu1 %v1149_v7  ;;  %v1161_v17 = vpack.c.bf16 %v564_v16, %v563_v15  ;;  %v662_v20 = vld [vmem:[%s445_s22 + $0x10] sm:$0xff]  ;;  %v1165_v21 = vpack.c.bf16 %v661_v19, %v660_v18  ;;  %v663_v22 = vld [vmem:[%s445_s22 + $0x18] sm:$0xff]  ;;  %v664_v26 = vld [vmem:[%s445_s22 + $0x20] sm:$0xff] }
  0x17   : > { %1152 = vmatpush3.bf16.msra.mxu1 %v1149_v7  ;;  %v1169_v23 = vpack.c.bf16 %v663_v22, %v662_v20  ;;  %v665_v27 = vld [vmem:[%s445_s22 + $0x28] sm:$0xff]  ;;  %v666_v29 = vld [vmem:[%s445_s22 + $0x30] sm:$0xff]  ;;  %v667_v30 = vld [vmem:[%s445_s22 + $0x38] sm:$0xff] }
  0x18   : > { %1154 = vmatprep.subr.bf16.mxu1 %v1153_v10  ;;  %1092 = vmatmul.mubr.msk.f32.vlgmr.msra.gmra.mrb[0].mxu0 %vm471_vm1, %v468_v13  ;;  %v1173_v28 = vpack.c.bf16 %v665_v27, %v664_v26  ;;  %v1177_v31 = vpack.c.bf16 %v667_v30, %v666_v29  ;;  %v1040_v32 = vld [vmem:[%s440_s25] ss:$0 sm:$0xff]  ;;  %v763_v42 = vld [vmem:[%s453_s12 + $0x8] sm:$0xff]  ;;  %v764_v44 = vld [vmem:[%s453_s12 + $0x10] sm:$0xff] }
  0x19   : > { %1166 = vmatprep.subr.bf16.mxu0 %v1165_v21  ;;  %v762_v41 = vld [vmem:[%s453_s12] sm:$0xff]  ;;  %v765_v45 = vld [vmem:[%s453_s12 + $0x18] sm:$0xff] }
  0x1a   : > { %1168 = vmatpush3.bf16.msra.mxu0 %v1165_v21  ;;  %v1181_v43 = vpack.c.bf16 %v763_v42, %v762_v41  ;;  %v1185_v46 = vpack.c.bf16 %v765_v45, %v764_v44  ;;  %v1043_v47 = vld [vmem:[%s448_s15] ss:$0 sm:$0xff] }
  0x1b   : > { %1156 = vmatpush3.bf16.msra.mxu1 %v1153_v10  ;;  %1170 = vmatprep.subr.bf16.mxu0 %v1169_v23  ;;  %v1046_v56 = vld [vmem:[%s456_s18] ss:$0 sm:$0xff] }
  0x1c   : > { %1158 = vmatprep.subr.bf16.mxu1 %v1157_v14 }
  0x1e   : > { %1172 = vmatpush3.bf16.msra.mxu0 %v1169_v23 }
  0x1f   : > { %1160 = vmatpush3.bf16.msra.mxu1 %v1157_v14  ;;  %1174 = vmatprep.subr.bf16.mxu0 %v1173_v28 }
  0x20   : > { %1162 = vmatprep.subr.bf16.mxu1 %v1161_v17 }
  0x22   : > { %1176 = vmatpush3.bf16.msra.mxu0 %v1173_v28 }
  0x23   : > { %1164 = vmatpush3.bf16.msra.mxu1 %v1161_v17  ;;  %1178 = vmatprep.subr.bf16.mxu0 %v1177_v31 }
  0x24   : > { %1182 = vmatprep.subr.bf16.mxu1 %v1181_v43 }
  0x26   : > { %1180 = vmatpush3.bf16.msra.mxu0 %v1177_v31 }
  0xeb   : > { %v1093_v24 = vpop.f32.mrb[0].mxu0 }
  0xec   : > { %v548_v25 = vpop.f32.mrb[1].mxu0 }
  0xed   : > { %1110 = vmatprep.mubr.msk.f32.mxu1 %vm572_vm4, %v548_v25 }
  0xee   : > { %1111 = vmatmul.mubr.msk.f32.vlgmr.msra.gmra.mrb[0].mxu1 %vm572_vm4, %v1093_v24 }
  0xef   : > { %1184 = vmatpush3.bf16.msra.mxu1 %v1181_v43 }
  0xf0   : > { %1186 = vmatprep.subr.bf16.mxu1 %v1185_v46 }
  0xf3   : > { %1188 = vmatpush3.bf16.msra.mxu1 %v1185_v46 }
 0x1c1   : > { %v1112_v33 = vpop.f32.mrb[0].mxu1 }
 0x1c2   : > { %v651_v34 = vadd.f32 %v1112_v33, %v1040_v32  ;;  %v645_v35 = vpop.f32.mrb[1].mxu1 }
 0x1c3   : > { %v646_v36 = vadd.f32 %v1040_v32, %v645_v35 }
 0x1c4   : > { %v657_v37 = vmul.f32 0.01, %v651_v34  ;;  %vm655_vm5 = vcmp.ge.f32.partialorder %v651_v34, 0.0 }
 0x1c5   : > { %vm654_vm6 = vcmp.ge.f32.partialorder %v646_v36, 0.0  ;;  %v656_v38 = vmul.f32 0.01, %v646_v36 }
 0x1c6   : > { %v659_v40 = vsel %vm655_vm5, %v651_v34, %v657_v37 }
 0x1c7   : > { %v658_v39 = vsel %vm654_vm6, %v646_v36, %v656_v38 }
 0x1c8   : > { %1129 = vmatprep.mubr.msk.f32.mxu0 %vm572_vm4, %v658_v39 }
 0x1c9   : > { %1130 = vmatmul.mubr.msk.f32.vlgmr.msra.gmra.mrb[2].mxu0 %vm572_vm4, %v659_v40 }
 0x29c   : > { %v1131_v48 = vpop.f32.mrb[2].mxu0 }
 0x29d   : > { %v753_v49 = vadd.f32 %v1131_v48, %v1043_v47  ;;  %v747_v50 = vpop.f32.mrb[3].mxu0 }
 0x29e   : > { %v748_v51 = vadd.f32 %v1043_v47, %v747_v50 }
 0x29f   : > { %v759_v52 = vmul.f32 0.01, %v753_v49  ;;  %vm757_vm7 = vcmp.ge.f32.partialorder %v753_v49, 0.0 }
 0x2a0   : > { %vm756_vm8 = vcmp.ge.f32.partialorder %v748_v51, 0.0  ;;  %v758_v53 = vmul.f32 0.01, %v748_v51 }
 0x2a1   : > { %v761_v55 = vsel %vm757_vm7, %v753_v49, %v759_v52 }
 0x2a2   : > { %v760_v54 = vsel %vm756_vm8, %v748_v51, %v758_v53 }
 0x2a3   : > { %1140 = vmatprep.mubr.msk.f32.mxu1 %vm773_vm9, %v760_v54 }
 0x2a4   : > { %1141 = vmatmul.mubr.msk.f32.vlgmr.msra.gmra.mrb[2].mxu1 %vm773_vm9, %v761_v55 }
 0x377   : > { %v1142_v57 = vpop.f32.mrb[2].mxu1 }
 0x378   : > { %v852_v58 = vadd.f32 %v1142_v57, %v1046_v56  ;;  %v846_v59 = vpop.f32.mrb[3].mxu1 }
 0x379   : > { %v847_v60 = vadd.f32 %v1046_v56, %v846_v59 }
 0x37a   : > { %857 = vst.msk [vmem:[%s465_s21 + $0x8] sm:$0xf] %vm856_vm10, %v852_v58 }
 0x37b   : > { %855 = vst.msk [vmem:[%s465_s21] sm:$0xff] %vm773_vm9, %v847_v60 }
 0x37c PF: > { %s18_s29 = sadd.s32 1, %s1236_s29   ;;  %s1380_s27 = smov %s1232_s28 }
 0x37d   : > { %p15_p5 = scmp.ge.s32.totalorder %s18_s29, 4   ;;  %s1381_s28 = smov %s1383_s30 }
 0x37f   :  { %17 = sbr.rel (!%p15_p5) target bundleno = 2 (0x2), region = 103 }

</bundles_post_ra>
